<compile_context>
chip_gen: v5e
topology: v5e:2x2
jax: 0.10.0
libtpu: 0.0.40
codegen_flags: <defaults>
</compile_context>

<pallas_src>
import jax
import jax.numpy as jnp
from jax.experimental import pallas as pl
from jax.experimental.pallas import tpu as pltpu


def mlp_kernel(xb_ref, w1_ref, b1_ref, w2_ref, b2_ref, o_ref):
    # Layout inside the kernel: sublanes = hidden units (H_pad),
    #                           lanes    = batch rows   (N_pad).
    # hidden = relu(x * w1 + b1)  -- the K=1 matmul as pure VPU elementwise.
    h = jnp.maximum(xb_ref[...] * w1_ref[...] + b1_ref[...], 0.0)
    # out = sum_h(h * w2) + b2    -- the N=1 matmul as a sublane reduce (XLU).
    o = jnp.sum(h * w2_ref[...], axis=0, keepdims=True) + b2_ref[...]
    # Store a full (8, N_pad) tile -> unmasked, lane-dense vst.
    o_ref[...] = jnp.broadcast_to(o, o_ref.shape).astype(o_ref.dtype)


@jax.jit
def net_forward(x, w1, b1, w2, b2):
    # PyTorch-convention operands: x (N,1), w1 (1,H), b1 (1,H), w2 (H,1), b2 (1,1)
    n, n_feature = x.shape
    n_hidden = w1.shape[1]

    n_pad = 128 * pl.cdiv(n, 128)        # lane-align the batch axis
    h_pad = 8 * pl.cdiv(n_hidden, 8)     # sublane-align the hidden axis

    # One-time layout prep in XLA (outside the kernel): batch -> lanes,
    # hidden -> sublanes; zero-pad so padded hidden rows contribute nothing.
    f32 = jnp.float32
    x_lane = jnp.zeros((1, n_pad), f32).at[0, :n].set(x[:, 0].astype(f32))
    xb = jnp.broadcast_to(x_lane, (h_pad, n_pad))
    w1c = jnp.zeros((h_pad, 1), f32).at[:n_hidden, 0].set(w1[0, :].astype(f32))
    b1c = jnp.zeros((h_pad, 1), f32).at[:n_hidden, 0].set(b1[0, :].astype(f32))
    w2c = jnp.zeros((h_pad, 1), f32).at[:n_hidden, 0].set(w2[:, 0].astype(f32))
    w1b = jnp.broadcast_to(w1c, (h_pad, n_pad))
    b1b = jnp.broadcast_to(b1c, (h_pad, n_pad))
    w2b = jnp.broadcast_to(w2c, (h_pad, n_pad))
    b2b = jnp.broadcast_to(b2.reshape(1, 1).astype(f32), (1, n_pad))

    full = lambda shape: pl.BlockSpec(shape, lambda: tuple(0 for _ in shape))

    out_pad = pl.pallas_call(
        mlp_kernel,
        out_shape=jax.ShapeDtypeStruct((8, n_pad), f32),
        in_specs=[
            full(xb.shape),
            full(w1b.shape),
            full(b1b.shape),
            full(w2b.shape),
            full(b2b.shape),
        ],
        out_specs=full((8, n_pad)),
        compiler_params=pltpu.CompilerParams(),
    )(xb, w1b, b1b, w2b, b2b)

    # Un-pad / un-transpose back to PyTorch's (N, n_output) layout.
    return out_pad[0, :n][:, None].astype(x.dtype)
    # TODO(synk): if batch is ever scaled up, add grid=(cdiv(N, TM),) with
    # dimension_semantics=("parallel",) so v7x's second TensorCore is used.


def init_params(key, n_feature, n_hidden, n_output):
    # Deterministic init mimicking torch.nn.Linear's U(-1/sqrt(fan_in), 1/sqrt(fan_in)).
    k1, k2, k3, k4 = jax.random.split(key, 4)
    lim1 = 1.0 / jnp.sqrt(jnp.float32(n_feature))
    lim2 = 1.0 / jnp.sqrt(jnp.float32(n_hidden))
    w1 = jax.random.uniform(k1, (n_feature, n_hidden), jnp.float32, -lim1, lim1)
    b1 = jax.random.uniform(k2, (1, n_hidden), jnp.float32, -lim1, lim1)
    w2 = jax.random.uniform(k3, (n_hidden, n_output), jnp.float32, -lim2, lim2)
    b2 = jax.random.uniform(k4, (1, n_output), jnp.float32, -lim2, lim2)
    return w1, b1, w2, b2


if __name__ == "__main__":
    # Matches the script: x = unsqueeze(linspace(-1, 1, 100), 1) -> (100, 1)
    n_feature, n_hidden, n_output = 1, 32, 1
    x = jnp.expand_dims(jnp.linspace(-1.0, 1.0, 100, dtype=jnp.float32), axis=1)

    key = jax.random.PRNGKey(0)
    w1, b1, w2, b2 = init_params(key, n_feature, n_hidden, n_output)

    out = net_forward(x, w1, b1, w2, b2)
    out = jax.block_until_ready(out)

    # Pure-JAX reference check of the same forward pass.
    ref = jnp.maximum(x @ w1 + b1, 0.0) @ w2 + b2
    assert out.shape == (100, n_output)
    assert jnp.allclose(out, ref, atol=1e-5, rtol=1e-5)

    print("KERNEL_OK")
</pallas_src>

<mosaic_0001>
module attributes {stable_mosaic.version = 11 : i64} {
  func.func @mlp_kernel(%arg0: memref<32x128xf32, #tpu.memory_space<vmem>>, %arg1: memref<32x128xf32, #tpu.memory_space<vmem>>, %arg2: memref<32x128xf32, #tpu.memory_space<vmem>>, %arg3: memref<32x128xf32, #tpu.memory_space<vmem>>, %arg4: memref<1x128xf32, #tpu.memory_space<vmem>>, %arg5: memref<8x128xf32, #tpu.memory_space<vmem>>) attributes {dimension_semantics = [], scalar_prefetch = 0 : i64, scratch_operands = 0 : i64, tpu.core_type = #tpu.core_type<tc>} {
    %c0 = arith.constant 0 : index
    %c0_0 = arith.constant 0 : index
    %0 = vector.load %arg0[%c0, %c0_0] : memref<32x128xf32, #tpu.memory_space<vmem>>, vector<32x128xf32>
    %c0_1 = arith.constant 0 : index
    %c0_2 = arith.constant 0 : index
    %1 = vector.load %arg1[%c0_1, %c0_2] : memref<32x128xf32, #tpu.memory_space<vmem>>, vector<32x128xf32>
    %2 = arith.mulf %0, %1 : vector<32x128xf32>
    %c0_3 = arith.constant 0 : index
    %c0_4 = arith.constant 0 : index
    %3 = vector.load %arg2[%c0_3, %c0_4] : memref<32x128xf32, #tpu.memory_space<vmem>>, vector<32x128xf32>
    %4 = arith.addf %2, %3 : vector<32x128xf32>
    %cst = arith.constant 0.000000e+00 : f32
    %5 = vector.broadcast %cst : f32 to vector<32x128xf32>
    %6 = arith.maximumf %4, %5 : vector<32x128xf32>
    %c0_5 = arith.constant 0 : index
    %c0_6 = arith.constant 0 : index
    %7 = vector.load %arg3[%c0_5, %c0_6] : memref<32x128xf32, #tpu.memory_space<vmem>>, vector<32x128xf32>
    %8 = arith.mulf %6, %7 : vector<32x128xf32>
    %cst_7 = arith.constant dense<0.000000e+00> : vector<128xf32>
    %9 = vector.multi_reduction <add>, %8, %cst_7 [0] : vector<32x128xf32> to vector<128xf32>
    %10 = vector.shape_cast %9 : vector<128xf32> to vector<1x128xf32>
    %c0_8 = arith.constant 0 : index
    %c0_9 = arith.constant 0 : index
    %11 = vector.load %arg4[%c0_8, %c0_9] : memref<1x128xf32, #tpu.memory_space<vmem>>, vector<1x128xf32>
    %12 = arith.addf %10, %11 : vector<1x128xf32>
    %13 = vector.shape_cast %12 : vector<1x128xf32> to vector<1x128xf32>
    %14 = vector.broadcast %13 : vector<1x128xf32> to vector<8x128xf32>
    %c0_10 = arith.constant 0 : index
    %c0_11 = arith.constant 0 : index
    %15 = vector.load %arg5[%c0_10, %c0_11] : memref<8x128xf32, #tpu.memory_space<vmem>>, vector<8x128xf32>
    tpu.vector_store %arg5[%c0_10, %c0_11], %14 {strides = array<i32>} : memref<8x128xf32, #tpu.memory_space<vmem>>, vector<8x128xf32>,
    return
  }
}

</mosaic_0001>

<bundles_post_ra>
// kernel: net_forward.1
= control target key start
LH: loop header
LB: loop body
LE: loop exit
PB: predicated region body
PF: predicated region fallthrough
CT: control target
= control target key end

     0   :  { %s153_s0 = inlined_call_operand.vmem [shape: f32[32,128], index: 0, kind: input, shape index: {}]   ;;  %s154_s1 = inlined_call_operand.vmem [shape: f32[32,128], index: 1, kind: input, shape index: {}]   ;;  %s155_s2 = inlined_call_operand.vmem [shape: f32[32,128], index: 2, kind: input, shape index: {}]   ;;  %s156_s3 = inlined_call_operand.vmem [shape: f32[32,128], index: 3, kind: input, shape index: {}]   ;;  %s157_s4 = inlined_call_operand.vmem [shape: f32[1,128], index: 4, kind: input, shape index: {}]   ;;  %s158_s5 = inlined_call_operand.vmem [shape: f32[8,128], index: 5, kind: output, shape index: {}]  }
   0x1   :  { %v20_v0 = vld [vmem:[%s153_s0] sm:$0xff]  ;;  %v21_v1 = vld [vmem:[%s153_s0 + $0x8] sm:$0xff]  ;;  %v22_v2 = vld [vmem:[%s153_s0 + $0x10] sm:$0xff] }
   0x2   :  { %v23_v3 = vld [vmem:[%s153_s0 + $0x18] sm:$0xff]  ;;  %v24_v4 = vld [vmem:[%s154_s1] sm:$0xff]  ;;  %v25_v5 = vld [vmem:[%s154_s1 + $0x8] sm:$0xff] }
   0x3   :  { %v26_v6 = vld [vmem:[%s154_s1 + $0x10] sm:$0xff]  ;;  %v27_v7 = vld [vmem:[%s154_s1 + $0x18] sm:$0xff]  ;;  %v28_v8 = vmul.f32 %v24_v4, %v20_v0  ;;  %v29_v9 = vmul.f32 %v25_v5, %v21_v1  ;;  %v32_v10 = vld [vmem:[%s155_s2] sm:$0xff] }
   0x4   :  { %v30_v11 = vmul.f32 %v26_v6, %v22_v2  ;;  %v31_v12 = vmul.f32 %v27_v7, %v23_v3  ;;  %v33_v13 = vld [vmem:[%s155_s2 + $0x8] sm:$0xff]  ;;  %v34_v14 = vld [vmem:[%s155_s2 + $0x10] sm:$0xff]  ;;  %v35_v15 = vld [vmem:[%s155_s2 + $0x18] sm:$0xff] }
   0x5   :  { %v36_v16 = vadd.f32 %v32_v10, %v28_v8  ;;  %v37_v17 = vadd.f32 %v33_v13, %v29_v9  ;;  %v44_v20 = vld [vmem:[%s156_s3] sm:$0xff]  ;;  %v45_v21 = vld [vmem:[%s156_s3 + $0x8] sm:$0xff]  ;;  %v46_v24 = vld [vmem:[%s156_s3 + $0x10] sm:$0xff] }
   0x6   :  { %v38_v18 = vadd.f32 %v34_v14, %v30_v11  ;;  %v39_v19 = vadd.f32 %v35_v15, %v31_v12  ;;  %v47_v27 = vld [vmem:[%s156_s3 + $0x18] sm:$0xff]  ;;  %v61_v40 = vld [vmem:[%s157_s4] sm:$0x1] }
   0x7   :  { %v40_v22 = vmax.f32 %v36_v16, 0.0  ;;  %v41_v23 = vmax.f32 %v37_v17, 0.0 }
   0x8   :  { %v42_v25 = vmax.f32 %v38_v18, 0.0  ;;  %v43_v26 = vmax.f32 %v39_v19, 0.0 }
   0x9   :  { %v48_v28 = vmul.f32 %v44_v20, %v40_v22  ;;  %v49_v29 = vmul.f32 %v45_v21, %v41_v23 }
   0xa   :  { %v50_v30 = vmul.f32 %v46_v24, %v42_v25  ;;  %v51_v31 = vmul.f32 %v47_v27, %v43_v26 }
   0xb   :  { %v52_v32 = vadd.f32 %v49_v29, %v48_v28 }
   0xd   :  { %v53_v33 = vadd.f32 %v52_v32, %v50_v30 }
   0xf   :  { %v54_v34 = vadd.f32 %v53_v33, %v51_v31 }
  0x11   :  { %v55_v35 = vrot.slane %v54_v34, 4 }
  0x13   :  { %v56_v36 = vadd.f32 %v55_v35, %v54_v34 }
  0x15   :  { %v57_v37 = vrot.slane %v56_v36, 2 }
  0x17   :  { %v58_v38 = vadd.f32 %v57_v37, %v56_v36 }
  0x19   :  { %v59_v39 = vrot.slane %v58_v38, 1 }
  0x1b   :  { %v60_v41 = vadd.f32 %v59_v39, %v58_v38 }
  0x1d   :  { %v62_v42 = vadd.f32 %v61_v40, %v60_v41 }
  0x1f   :  { %v63_v43 = vperm.slane %v62_v42, 0 }
  0x21   :  { %64 = vst [vmem:[%s158_s5] sm:$0xff] %v63_v43 }

</bundles_post_ra>
